<compile_context>
chip_gen: v5e
topology: v5e:2x2
jax: 0.10.0
libtpu: 0.0.40
codegen_flags: <defaults>
</compile_context>

<pallas_src>
import functools

import jax
import jax.numpy as jnp
from jax.experimental import pallas as pl
from jax.experimental.pallas import tpu as pltpu

EPS = 1e-5                      # nn.BatchNorm1d default eps
K = 4                           # Conv1d kernel_size == stride (both convs)
POOL = 64                       # MaxPool1d kernel size
_HI = jax.lax.Precision.HIGHEST


def _fused_kernel(p1_ref, w1_ref, b1_ref, g1_ref, be1_ref,
                  w2_ref, b2_ref, g2_ref, be2_ref, wlin_ref, o_ref,
                  *, n_batch, l16):
    """Whole FineTuneDBP forward, channels-on-sublanes / positions-on-lanes.

      p1_ref : (Cin*4, 4*N*L16)  im2col patches of x, columns ordered (j2, n, l2)
      w1_ref : (mid,  Cin*4)     conv1 weight
      w2_ref : (4, out, mid)     conv2 weight, tap-major
      b*,g*,be* : (C, 1)         bias / BN affine, column vectors
      wlin_ref : (1,) SMEM       Linear(1,1).weight scalar
      o_ref  : (out, N)          pooled * wlin, batch on lanes
    """
    blk = n_batch * l16                                   # lanes per conv2 tap block

    # ---- Conv1d(k=4, s=4) #1 as one MXU matmul + bias ------------------------
    y1 = jnp.dot(w1_ref[...], p1_ref[...],
                 preferred_element_type=jnp.float32, precision=_HI)
    y1 = y1 + b1_ref[...]                                 # (mid, 4*N*L16)

    # ---- BatchNorm1d (training batch stats, single pass: sum & sumsq) --------
    n1 = y1.shape[1]
    s1 = jnp.sum(y1, axis=1, keepdims=True)               # (mid, 1) lane reduce
    q1 = jnp.sum(y1 * y1, axis=1, keepdims=True)
    mean1 = s1 * (1.0 / n1)
    var1 = q1 * (1.0 / n1) - mean1 * mean1
    y1 = (y1 - mean1) * jax.lax.rsqrt(var1 + EPS) * g1_ref[...] + be1_ref[...]

    # ---- ReLU -----------------------------------------------------------------
    a1 = jnp.maximum(y1, 0.0)

    # ---- Conv1d(k=4, s=4) #2: 4 tap matmuls over aligned lane blocks ----------
    y2 = jnp.dot(w2_ref[0], a1[:, 0:blk],
                 preferred_element_type=jnp.float32, precision=_HI)
    for j in range(1, K):
        y2 = y2 + jnp.dot(w2_ref[j], a1[:, j * blk:(j + 1) * blk],
                          preferred_element_type=jnp.float32, precision=_HI)
    y2 = y2 + b2_ref[...]                                 # (out, N*L16), cols (n, l2)

    # ---- ReLU, then BatchNorm1d (training batch stats, single pass) -----------
    y2 = jnp.maximum(y2, 0.0)
    n2 = y2.shape[1]
    s2 = jnp.sum(y2, axis=1, keepdims=True)
    q2 = jnp.sum(y2 * y2, axis=1, keepdims=True)
    mean2 = s2 * (1.0 / n2)
    var2 = q2 * (1.0 / n2) - mean2 * mean2
    y2 = (y2 - mean2) * jax.lax.rsqrt(var2 + EPS) * g2_ref[...] + be2_ref[...]

    # ---- MaxPool1d(64) per batch element + Linear(1, 1, bias=False) -----------
    # Each batch's 64 pooled positions are a contiguous lane slice; keepdims max
    # keeps channels on sublanes so the result assembles with no transposes and
    # is written back with one full-tile store.
    w_lin = wlin_ref[0]
    cols = [jnp.max(y2[:, n * l16:(n + 1) * l16], axis=1, keepdims=True)
            for n in range(n_batch)]                      # each (out, 1)
    o_ref[...] = jnp.concatenate(cols, axis=1) * w_lin    # (out, N)


def fine_tune_dbp_forward(x, params):
    """x: (N, C_in, L) float32, PyTorch NCL convention. Returns (N, C_out, 1)."""
    w1, b1, g1, be1 = params["w1"], params["b1"], params["g1"], params["be1"]
    w2, b2, g2, be2 = params["w2"], params["b2"], params["g2"], params["be2"]
    wlin = params["wlin"]

    N, Cin, L = x.shape
    mid = w1.shape[0]
    out = w2.shape[0]
    L16 = L // (K * K)
    assert L % (K * K) == 0 and L16 == POOL, \
        "MaxPool1d(64) + Linear(in_features=1) requires L == 1024"

    # im2col for conv1 (k=4, s=4): rows = (c, j1) taps, cols = (j2, n, l2) positions.
    # This column order makes every conv2 tap a 128-aligned lane slice in-kernel.
    p1 = jnp.transpose(x.reshape(N, Cin, L16, K, K), (1, 4, 3, 0, 2))
    p1 = p1.reshape(Cin * K, K * N * L16)                 # (Cin*4, 4*N*L16)

    w1m = w1.reshape(mid, Cin * K)                        # (mid, Cin*4), (c, j1)-major
    w2m = jnp.transpose(w2, (2, 0, 1))                    # (4, out, mid), tap-major
    col = lambda v: v.reshape(-1, 1)

    vmem = pl.BlockSpec(memory_space=pltpu.MemorySpace.VMEM)
    smem = pl.BlockSpec(memory_space=pltpu.MemorySpace.SMEM)

    y = pl.pallas_call(
        functools.partial(_fused_kernel, n_batch=N, l16=L16),
        out_shape=jax.ShapeDtypeStruct((out, N), jnp.float32),
        in_specs=[vmem] * 9 + [smem],
        out_specs=vmem,
    )(p1, w1m, col(b1), col(g1), col(be1),
      w2m, col(b2), col(g2), col(be2), wlin.reshape(1))

    return y.T.reshape(N, out, 1)                         # PyTorch layout (N, C_out, 1)


# ---------------- pure-JAX reference (for correctness check only) ----------------
def reference(x, p):
    def bn(y, g, b):                                      # training-mode BatchNorm1d
        mean = jnp.mean(y, axis=(0, 2), keepdims=True)
        var = jnp.mean((y - mean) ** 2, axis=(0, 2), keepdims=True)
        return (y - mean) / jnp.sqrt(var + EPS) * g[None, :, None] + b[None, :, None]

    dn = ("NCH", "OIH", "NCH")
    y = jax.lax.conv_general_dilated(x, p["w1"], (4,), "VALID",
                                     dimension_numbers=dn,
                                     precision=_HI) + p["b1"][None, :, None]
    y = jnp.maximum(bn(y, p["g1"], p["be1"]), 0.0)
    y = jax.lax.conv_general_dilated(y, p["w2"], (4,), "VALID",
                                     dimension_numbers=dn,
                                     precision=_HI) + p["b2"][None, :, None]
    y = bn(jnp.maximum(y, 0.0), p["g2"], p["be2"])
    N, C, Lp = y.shape
    y = jnp.max(y.reshape(N, C, Lp // POOL, POOL), axis=-1)     # MaxPool1d(64)
    return y * p["wlin"][0, 0]                                  # Linear(1,1,bias=False)


if __name__ == "__main__":
    N, C_IN, MID, C_OUT, L = 2, 4, 8, 16, 1024

    key = jax.random.PRNGKey(0)
    ks = jax.random.split(key, 10)
    params = {
        "w1": 0.1 * jax.random.normal(ks[0], (MID, C_IN, 4), jnp.float32),
        "b1": 0.1 * jax.random.normal(ks[1], (MID,), jnp.float32),
        "g1": 1.0 + 0.1 * jax.random.normal(ks[2], (MID,), jnp.float32),
        "be1": 0.1 * jax.random.normal(ks[3], (MID,), jnp.float32),
        "w2": 0.1 * jax.random.normal(ks[4], (C_OUT, MID, 4), jnp.float32),
        "b2": 0.1 * jax.random.normal(ks[5], (C_OUT,), jnp.float32),
        "g2": 1.0 + 0.1 * jax.random.normal(ks[6], (C_OUT,), jnp.float32),
        "be2": 0.1 * jax.random.normal(ks[7], (C_OUT,), jnp.float32),
        "wlin": jax.random.normal(ks[8], (1, 1), jnp.float32),   # nn.Linear(1,1).weight
    }
    x = jax.random.normal(ks[9], (N, C_IN, L), jnp.float32)

    fwd = jax.jit(fine_tune_dbp_forward)
    out = jax.block_until_ready(fwd(x, params))
    ref = jax.block_until_ready(reference(x, params))

    assert out.shape == (N, C_OUT, 1)
    assert jnp.allclose(out, ref, atol=1e-4, rtol=1e-4)
    # TODO(synk): BatchNorm running_mean/running_var bookkeeping is a training-time
    # side effect and is not modeled; forward math uses batch statistics (train mode).
    print("KERNEL_OK")
</pallas_src>

<mosaic_0001>
module attributes {stable_mosaic.version = 11 : i64} {
  func.func @_fused_kernel(%arg0: memref<16x512xf32, #tpu.memory_space<vmem>>, %arg1: memref<8x16xf32, #tpu.memory_space<vmem>>, %arg2: memref<8x1xf32, #tpu.memory_space<vmem>>, %arg3: memref<8x1xf32, #tpu.memory_space<vmem>>, %arg4: memref<8x1xf32, #tpu.memory_space<vmem>>, %arg5: memref<4x16x8xf32, #tpu.memory_space<vmem>>, %arg6: memref<16x1xf32, #tpu.memory_space<vmem>>, %arg7: memref<16x1xf32, #tpu.memory_space<vmem>>, %arg8: memref<16x1xf32, #tpu.memory_space<vmem>>, %arg9: memref<1xf32, #tpu.memory_space<smem>>, %arg10: memref<16x2xf32, #tpu.memory_space<vmem>>) attributes {dimension_semantics = [], scalar_prefetch = 0 : i64, scratch_operands = 0 : i64, tpu.core_type = #tpu.core_type<tc>} {
    %c0 = arith.constant 0 : index
    %c0_0 = arith.constant 0 : index
    %0 = vector.load %arg1[%c0, %c0_0] : memref<8x16xf32, #tpu.memory_space<vmem>>, vector<8x16xf32>
    %c0_1 = arith.constant 0 : index
    %c0_2 = arith.constant 0 : index
    %1 = vector.load %arg0[%c0_1, %c0_2] : memref<16x512xf32, #tpu.memory_space<vmem>>, vector<16x512xf32>
    %cst = arith.constant dense<0.000000e+00> : vector<8x512xf32>
    %2 = tpu.matmul %0, %1, %cst {dimension_numbers = #tpu.dot_dimension_numbers<[1], [0], [0], [1], [0, 0, 1, 1], [], []>, precision = #tpu.contract_precision<fp32>} : vector<8x16xf32>, vector<16x512xf32>, vector<8x512xf32> -> vector<8x512xf32>
    %c0_3 = arith.constant 0 : index
    %c0_4 = arith.constant 0 : index
    %3 = vector.load %arg2[%c0_3, %c0_4] : memref<8x1xf32, #tpu.memory_space<vmem>>, vector<8x1xf32>
    %4 = vector.broadcast %3 : vector<8x1xf32> to vector<8x512xf32>
    %5 = arith.addf %2, %4 : vector<8x512xf32>
    %cst_5 = arith.constant dense<0.000000e+00> : vector<8xf32>
    %6 = vector.multi_reduction <add>, %5, %cst_5 [1] : vector<8x512xf32> to vector<8xf32>
    %7 = vector.shape_cast %6 : vector<8xf32> to vector<8x1xf32>
    %8 = arith.mulf %5, %5 : vector<8x512xf32>
    %cst_6 = arith.constant dense<0.000000e+00> : vector<8xf32>
    %9 = vector.multi_reduction <add>, %8, %cst_6 [1] : vector<8x512xf32> to vector<8xf32>
    %10 = vector.shape_cast %9 : vector<8xf32> to vector<8x1xf32>
    %cst_7 = arith.constant 0.001953125 : f32
    %11 = vector.broadcast %cst_7 : f32 to vector<8x1xf32>
    %12 = arith.mulf %7, %11 : vector<8x1xf32>
    %cst_8 = arith.constant 0.001953125 : f32
    %13 = vector.broadcast %cst_8 : f32 to vector<8x1xf32>
    %14 = arith.mulf %10, %13 : vector<8x1xf32>
    %15 = arith.mulf %12, %12 : vector<8x1xf32>
    %16 = arith.subf %14, %15 : vector<8x1xf32>
    %17 = vector.broadcast %12 : vector<8x1xf32> to vector<8x512xf32>
    %18 = arith.subf %5, %17 : vector<8x512xf32>
    %cst_9 = arith.constant 9.99999974E-6 : f32
    %19 = vector.broadcast %cst_9 : f32 to vector<8x1xf32>
    %20 = arith.addf %16, %19 : vector<8x1xf32>
    %21 = math.rsqrt %20 : vector<8x1xf32>
    %22 = vector.broadcast %21 : vector<8x1xf32> to vector<8x512xf32>
    %23 = arith.mulf %18, %22 : vector<8x512xf32>
    %c0_10 = arith.constant 0 : index
    %c0_11 = arith.constant 0 : index
    %24 = vector.load %arg3[%c0_10, %c0_11] : memref<8x1xf32, #tpu.memory_space<vmem>>, vector<8x1xf32>
    %25 = vector.broadcast %24 : vector<8x1xf32> to vector<8x512xf32>
    %26 = arith.mulf %23, %25 : vector<8x512xf32>
    %c0_12 = arith.constant 0 : index
    %c0_13 = arith.constant 0 : index
    %27 = vector.load %arg4[%c0_12, %c0_13] : memref<8x1xf32, #tpu.memory_space<vmem>>, vector<8x1xf32>
    %28 = vector.broadcast %27 : vector<8x1xf32> to vector<8x512xf32>
    %29 = arith.addf %26, %28 : vector<8x512xf32>
    %cst_14 = arith.constant 0.000000e+00 : f32
    %30 = vector.broadcast %cst_14 : f32 to vector<8x512xf32>
    %31 = arith.maximumf %29, %30 : vector<8x512xf32>
    %c0_15 = arith.constant 0 : index
    %c0_16 = arith.constant 0 : index
    %c0_17 = arith.constant 0 : index
    %32 = vector.load %arg5[%c0_15, %c0_16, %c0_17] : memref<4x16x8xf32, #tpu.memory_space<vmem>>, vector<1x16x8xf32>
    %33 = vector.shape_cast %32 : vector<1x16x8xf32> to vector<16x8xf32>
    %34 = vector.extract_strided_slice %31 {offsets = [0, 0], sizes = [8, 128], strides = [1, 1]} : vector<8x512xf32> to vector<8x128xf32>
    %cst_18 = arith.constant dense<0.000000e+00> : vector<16x128xf32>
    %35 = tpu.matmul %33, %34, %cst_18 {dimension_numbers = #tpu.dot_dimension_numbers<[1], [0], [0], [1], [0, 0, 1, 1], [], []>, precision = #tpu.contract_precision<fp32>} : vector<16x8xf32>, vector<8x128xf32>, vector<16x128xf32> -> vector<16x128xf32>
    %c1 = arith.constant 1 : index
    %c0_19 = arith.constant 0 : index
    %c0_20 = arith.constant 0 : index
    %36 = vector.load %arg5[%c1, %c0_19, %c0_20] : memref<4x16x8xf32, #tpu.memory_space<vmem>>, vector<1x16x8xf32>
    %37 = vector.shape_cast %36 : vector<1x16x8xf32> to vector<16x8xf32>
    %38 = vector.extract_strided_slice %31 {offsets = [0, 128], sizes = [8, 128], strides = [1, 1]} : vector<8x512xf32> to vector<8x128xf32>
    %cst_21 = arith.constant dense<0.000000e+00> : vector<16x128xf32>
    %39 = tpu.matmul %37, %38, %cst_21 {dimension_numbers = #tpu.dot_dimension_numbers<[1], [0], [0], [1], [0, 0, 1, 1], [], []>, precision = #tpu.contract_precision<fp32>} : vector<16x8xf32>, vector<8x128xf32>, vector<16x128xf32> -> vector<16x128xf32>
    %40 = arith.addf %35, %39 : vector<16x128xf32>
    %c2 = arith.constant 2 : index
    %c0_22 = arith.constant 0 : index
    %c0_23 = arith.constant 0 : index
    %41 = vector.load %arg5[%c2, %c0_22, %c0_23] : memref<4x16x8xf32, #tpu.memory_space<vmem>>, vector<1x16x8xf32>
    %42 = vector.shape_cast %41 : vector<1x16x8xf32> to vector<16x8xf32>
    %43 = vector.extract_strided_slice %31 {offsets = [0, 256], sizes = [8, 128], strides = [1, 1]} : vector<8x512xf32> to vector<8x128xf32>
    %cst_24 = arith.constant dense<0.000000e+00> : vector<16x128xf32>
    %44 = tpu.matmul %42, %43, %cst_24 {dimension_numbers = #tpu.dot_dimension_numbers<[1], [0], [0], [1], [0, 0, 1, 1], [], []>, precision = #tpu.contract_precision<fp32>} : vector<16x8xf32>, vector<8x128xf32>, vector<16x128xf32> -> vector<16x128xf32>
    %45 = arith.addf %40, %44 : vector<16x128xf32>
    %c3 = arith.constant 3 : index
    %c0_25 = arith.constant 0 : index
    %c0_26 = arith.constant 0 : index
    %46 = vector.load %arg5[%c3, %c0_25, %c0_26] : memref<4x16x8xf32, #tpu.memory_space<vmem>>, vector<1x16x8xf32>
    %47 = vector.shape_cast %46 : vector<1x16x8xf32> to vector<16x8xf32>
    %48 = vector.extract_strided_slice %31 {offsets = [0, 384], sizes = [8, 128], strides = [1, 1]} : vector<8x512xf32> to vector<8x128xf32>
    %cst_27 = arith.constant dense<0.000000e+00> : vector<16x128xf32>
    %49 = tpu.matmul %47, %48, %cst_27 {dimension_numbers = #tpu.dot_dimension_numbers<[1], [0], [0], [1], [0, 0, 1, 1], [], []>, precision = #tpu.contract_precision<fp32>} : vector<16x8xf32>, vector<8x128xf32>, vector<16x128xf32> -> vector<16x128xf32>
    %50 = arith.addf %45, %49 : vector<16x128xf32>
    %c0_28 = arith.constant 0 : index
    %c0_29 = arith.constant 0 : index
    %51 = vector.load %arg6[%c0_28, %c0_29] : memref<16x1xf32, #tpu.memory_space<vmem>>, vector<16x1xf32>
    %52 = vector.broadcast %51 : vector<16x1xf32> to vector<16x128xf32>
    %53 = arith.addf %50, %52 : vector<16x128xf32>
    %cst_30 = arith.constant 0.000000e+00 : f32
    %54 = vector.broadcast %cst_30 : f32 to vector<16x128xf32>
    %55 = arith.maximumf %53, %54 : vector<16x128xf32>
    %cst_31 = arith.constant dense<0.000000e+00> : vector<16xf32>
    %56 = vector.multi_reduction <add>, %55, %cst_31 [1] : vector<16x128xf32> to vector<16xf32>
    %57 = vector.shape_cast %56 : vector<16xf32> to vector<16x1xf32>
    %58 = arith.mulf %55, %55 : vector<16x128xf32>
    %cst_32 = arith.constant dense<0.000000e+00> : vector<16xf32>
    %59 = vector.multi_reduction <add>, %58, %cst_32 [1] : vector<16x128xf32> to vector<16xf32>
    %60 = vector.shape_cast %59 : vector<16xf32> to vector<16x1xf32>
    %cst_33 = arith.constant 7.812500e-03 : f32
    %61 = vector.broadcast %cst_33 : f32 to vector<16x1xf32>
    %62 = arith.mulf %57, %61 : vector<16x1xf32>
    %cst_34 = arith.constant 7.812500e-03 : f32
    %63 = vector.broadcast %cst_34 : f32 to vector<16x1xf32>
    %64 = arith.mulf %60, %63 : vector<16x1xf32>
    %65 = arith.mulf %62, %62 : vector<16x1xf32>
    %66 = arith.subf %64, %65 : vector<16x1xf32>
    %67 = vector.broadcast %62 : vector<16x1xf32> to vector<16x128xf32>
    %68 = arith.subf %55, %67 : vector<16x128xf32>
    %cst_35 = arith.constant 9.99999974E-6 : f32
    %69 = vector.broadcast %cst_35 : f32 to vector<16x1xf32>
    %70 = arith.addf %66, %69 : vector<16x1xf32>
    %71 = math.rsqrt %70 : vector<16x1xf32>
    %72 = vector.broadcast %71 : vector<16x1xf32> to vector<16x128xf32>
    %73 = arith.mulf %68, %72 : vector<16x128xf32>
    %c0_36 = arith.constant 0 : index
    %c0_37 = arith.constant 0 : index
    %74 = vector.load %arg7[%c0_36, %c0_37] : memref<16x1xf32, #tpu.memory_space<vmem>>, vector<16x1xf32>
    %75 = vector.broadcast %74 : vector<16x1xf32> to vector<16x128xf32>
    %76 = arith.mulf %73, %75 : vector<16x128xf32>
    %c0_38 = arith.constant 0 : index
    %c0_39 = arith.constant 0 : index
    %77 = vector.load %arg8[%c0_38, %c0_39] : memref<16x1xf32, #tpu.memory_space<vmem>>, vector<16x1xf32>
    %78 = vector.broadcast %77 : vector<16x1xf32> to vector<16x128xf32>
    %79 = arith.addf %76, %78 : vector<16x128xf32>
    %c0_40 = arith.constant 0 : index
    %80 = memref.load %arg9[%c0_40] : memref<1xf32, #tpu.memory_space<smem>>
    %81 = vector.extract_strided_slice %79 {offsets = [0, 0], sizes = [16, 64], strides = [1, 1]} : vector<16x128xf32> to vector<16x64xf32>
    %cst_41 = arith.constant dense<0xFF800000> : vector<16xf32>
    %82 = vector.multi_reduction <maximumf>, %81, %cst_41 [1] : vector<16x64xf32> to vector<16xf32>
    %83 = vector.shape_cast %82 : vector<16xf32> to vector<16x1xf32>
    %84 = vector.extract_strided_slice %79 {offsets = [0, 64], sizes = [16, 64], strides = [1, 1]} : vector<16x128xf32> to vector<16x64xf32>
    %cst_42 = arith.constant dense<0xFF800000> : vector<16xf32>
    %85 = vector.multi_reduction <maximumf>, %84, %cst_42 [1] : vector<16x64xf32> to vector<16xf32>
    %86 = vector.shape_cast %85 : vector<16xf32> to vector<16x1xf32>
    %87 = tpu.concatenate %83, %86 in 1 : vector<16x1xf32>, vector<16x1xf32> -> vector<16x2xf32>
    %88 = vector.broadcast %80 : f32 to vector<16x2xf32>
    %89 = arith.mulf %87, %88 : vector<16x2xf32>
    %c0_43 = arith.constant 0 : index
    %c0_44 = arith.constant 0 : index
    %90 = vector.load %arg10[%c0_43, %c0_44] : memref<16x2xf32, #tpu.memory_space<vmem>>, vector<16x2xf32>
    tpu.vector_store %arg10[%c0_43, %c0_44], %89 {strides = array<i32>} : memref<16x2xf32, #tpu.memory_space<vmem>>, vector<16x2xf32>,
    return
  }
}

</mosaic_0001>

<bundles_post_ra>
// kernel: fine_tune_dbp_forward.1
= control target key start
LH: loop header
LB: loop body
LE: loop exit
PB: predicated region body
PF: predicated region fallthrough
CT: control target
= control target key end

     0   :  { %vm51_vm0 = vcmask 130048   ;;  %v1632_v3 = vmov 0   ;;  %vm757_vm1 = vcmask 64512   ;;  %vm1596_vm10 = vcmask 1048064   ;;  %s1930_s0 = inlined_call_operand.vmem [shape: f32[16,512], index: 0, kind: input, shape index: {}]   ;;  %s1931_s1 = inlined_call_operand.vmem [shape: f32[8,16], index: 1, kind: input, shape index: {}]   ;;  %s1932_s2 = inlined_call_operand.vmem [shape: f32[8,1], index: 2, kind: input, shape index: {}]   ;;  %s1933_s4 = inlined_call_operand.vmem [shape: f32[8,1], index: 4, kind: input, shape index: {}]   ;;  %s1934_s6 = inlined_call_operand.vmem [shape: f32[16,1], index: 6, kind: input, shape index: {}]   ;;  %s1935_s7 = inlined_call_operand.vmem [shape: f32[16,1], index: 7, kind: input, shape index: {}]   ;;  %s1936_s3 = inlined_call_operand.vmem [shape: f32[8,1], index: 3, kind: input, shape index: {}]   ;;  %s1937_s5 = inlined_call_operand.vmem [shape: f32[4,16,8], index: 5, kind: input, shape index: {}]   ;;  %s1938_s8 = inlined_call_operand.vmem [shape: f32[16,1], index: 8, kind: input, shape index: {}]   ;;  %s1939_s9 = inlined_call_operand.<no memory space> [shape: f32[1], index: 9, kind: input, shape index: {}]   ;;  %s1940_s10 = inlined_call_operand.vmem [shape: f32[16,2], index: 10, kind: output, shape index: {}]  }
   0x1   :  { %v41_v0 = vld [vmem:[%s1930_s0 + $0x20] sm:$0xff]  ;;  %1623 = vset.pattern.permute.xlu0 %v1632_v3  ;;  %1624 = vset.pattern.permute.xlu1 %v1632_v3  ;;  %v42_v7 = vld [vmem:[%s1930_s0 + $0x28] sm:$0xff]  ;;  %v43_v13 = vld [vmem:[%s1930_s0 + $0x30] sm:$0xff]  ;;  %vm1589_vm11 = vcmask 523264   ;;  %vm1603_vm13 = vcmask 7168   ;;  %vm1609_vm14 = vcmask 15360  }
   0x2   :  { %v37_v1 = vld [vmem:[%s1930_s0] sm:$0xff]  ;;  %v1697_v4 = vand.u32 4294901760, %v41_v0  ;;  %v38_v8 = vld [vmem:[%s1930_s0 + $0x8] sm:$0xff]  ;;  %1625 = vset.pattern.permute.xlu2 %v1632_v3  ;;  %v1712_v11 = vand.u32 4294901760, %v42_v7  ;;  %v1723_v16 = vand.u32 4294901760, %v43_v13  ;;  %v39_v17 = vld [vmem:[%s1930_s0 + $0x10] sm:$0xff] }
   0x3   :  { %v36_v2 = vld [vmem:[%s1931_s1] sm:$0xff]  ;;  %v1699_v5 = vand.u32 4294901760, %v37_v1  ;;  %v1714_v12 = vand.u32 4294901760, %v38_v8  ;;  %v44_v21 = vld [vmem:[%s1930_s0 + $0x38] sm:$0xff]  ;;  %v1741_v27 = vand.u32 4294901760, %v39_v17 }
   0x4   :  { %v53_v6 = vsel %vm51_vm0, %v36_v2, 0  ;;  %v45_v9 = vld [vmem:[%s1932_s2] sm:$0xff]  ;;  %v97_v14 = vsub.f32 %v41_v0, %v1697_v4  ;;  %154 = vmatpush.msra.mxu3 %v1697_v4  ;;  %70 = vmatpush.msra.mxu0 %v1697_v4  ;;  %v256_v19 = vsub.f32 %v42_v7, %v1712_v11  ;;  %v40_v28 = vld [vmem:[%s1930_s0 + $0x18] sm:$0xff]  ;;  %v1747_v31 = vsub.f32 %v43_v13, %v1723_v16 }
   0x5   :  { %v1710_v10 = vand.u32 4294901760, %v53_v6  ;;  %48 = vperm.xlu0 %1623, %v45_v9   ;;  %v103_v15 = vsub.f32 %v37_v1, %v1699_v5  ;;  %v262_v20 = vsub.f32 %v38_v8, %v1714_v12  ;;  %v1749_v32 = vand.u32 4294901760, %v44_v21 }
   0x6   :  { %129 = vmatpush.msra.mxu2 %v97_v14  ;;  %156 = vmatpush.msra.mxu3 %v1699_v5  ;;  %v98_v22 = vand.u32 4294901760, %v97_v14  ;;  %v257_v25 = vand.u32 4294901760, %v256_v19  ;;  %v1756_v38 = vand.u32 4294901760, %v40_v28  ;;  %v421_v42 = vsub.f32 %v39_v17, %v1741_v27 }
   0x7   :  { %v1729_v18 = vsub.f32 %v53_v6, %v1710_v10  ;;  %v104_v23 = vand.u32 4294901760, %v103_v15  ;;  %72 = vmatpush.msra.mxu0 %v1699_v5  ;;  %v263_v26 = vand.u32 4294901760, %v262_v20  ;;  %v416_v43 = vand.u32 4294901760, %v1747_v31 }
   0x8   :  { %132 = vmatpush.msra.mxu2 %v103_v15  ;;  %v99_v29 = vsub.f32 %v97_v14, %v98_v22  ;;  %v258_v34 = vsub.f32 %v256_v19, %v257_v25  ;;  %v574_v44 = vsub.f32 %v44_v21, %v1749_v32  ;;  %v580_v45 = vsub.f32 %v40_v28, %v1756_v38 }
   0x9   :  { %v1738_v24 = vand.u32 4294901760, %v1729_v18  ;;  %v105_v30 = vsub.f32 %v103_v15, %v104_v23  ;;  %181 = vmatpush.msrb.mxu0 %v98_v22  ;;  %135 = vmatmul.f32.vlgmr.msra.gmra.mxu2 %v1729_v18  ;;  %v264_v35 = vsub.f32 %v262_v20, %v263_v26  ;;  %v422_v46 = vand.u32 4294901760, %v421_v42 }
   0xa   :  { %v100_v36 = vand.u32 4294901760, %v99_v29  ;;  %229 = vmatpush.msrb.mxu2 %v1712_v11  ;;  %v259_v40 = vand.u32 4294901760, %v258_v34  ;;  %v417_v47 = vsub.f32 %v1747_v31, %v416_v43  ;;  %v575_v48 = vand.u32 4294901760, %v574_v44 }
   0xb   :  { %160 = vmatmul.f32.vlgmr.msra.gmra.mxu3 %v1738_v24  ;;  %v76_v33 = vsub.f32 %v1729_v18, %v1738_v24  ;;  %v106_v37 = vand.u32 4294901760, %v105_v30  ;;  %185 = vmatpush.msrb.mxu0 %v104_v23  ;;  %v265_v41 = vand.u32 4294901760, %v264_v35  ;;  %v581_v49 = vand.u32 4294901760, %v580_v45 }
   0xc   :  { %101 = vmatpush.msra.mxu1 %v100_v36  ;;  %231 = vmatpush.msrb.mxu2 %v1714_v12  ;;  %v423_v50 = vsub.f32 %v421_v42, %v422_v46  ;;  %v418_v51 = vand.u32 4294901760, %v417_v47  ;;  %v576_v52 = vsub.f32 %v574_v44, %v575_v48 }
   0xd   :  { %v1758_v39 = vand.u32 4294901760, %v76_v33  ;;  %260 = vmatpush.msrb.mxu3 %v259_v40  ;;  %v582_v53 = vsub.f32 %v580_v45, %v581_v49 }
   0xe   :  { %107 = vmatpush.msra.mxu1 %v106_v37  ;;  %340 = vmatpush.msra.mxu2 %v257_v25  ;;  %v424_v54 = vand.u32 4294901760, %v423_v50  ;;  %v577_v55 = vand.u32 4294901760, %v576_v52 }
   0xf   :  { %78 = vmatmul.f32.vlgmr.msra.gmra.mxu0 %v1758_v39  ;;  %109 = vmatmul.f32.vlgmr.msra.gmra.mxu1 %v1710_v10  ;;  %v583_v56 = vand.u32 4294901760, %v582_v53  ;;  %v1500_v53 = vld [vmem:[%s1934_s6] sm:$0xff] }
  0x10   :  { %266 = vmatpush.msrb.mxu3 %v265_v41  ;;  %206 = vmatpush.msrb.mxu1 %v1697_v4 }
  0x11   :  { %344 = vmatpush.msra.mxu2 %v263_v26  ;;  %288 = vmatpush.msra.mxu0 %v256_v19 }
  0x12   :  { %237 = vmatmul.f32.vlgmr.msrb.gmra.mxu2 %v1758_v39  ;;  %208 = vmatpush.msrb.mxu1 %v1699_v5 }
  0x13   :  { %268 = vmatmul.f32.vlgmr.msrb.gmra.mxu3 %v1710_v10  ;;  %447 = vmatpush.msrb.mxu2 %v1747_v31 }
  0x14   :  { %365 = vmatpush.msra.mxu3 %v1712_v11  ;;  %313 = vmatpush.msra.mxu1 %v1712_v11 }
  0x15   :  { %291 = vmatpush.msra.mxu0 %v262_v20  ;;  %450 = vmatpush.msrb.mxu2 %v421_v42 }
  0x16   :  { %367 = vmatpush.msra.mxu3 %v1714_v12  ;;  %315 = vmatpush.msra.mxu1 %v1714_v12 }
  0x17   :  { %187 = vmatmul.f32.vlgmr.msrb.gmra.mxu0 %v1710_v10  ;;  %210 = vmatmul.f32.vlgmr.msrb.gmra.mxu1 %v1710_v10 }
  0x18   :  { %472 = vmatpush.msrb.mxu3 %v1723_v16  ;;  %388 = vmatpush.msrb.mxu0 %v1723_v16 }
  0x19   :  { %419 = vmatpush.msrb.mxu1 %v418_v51 }
  0x1a   :  { %346 = vmatmul.f32.vlgmr.msra.gmra.mxu2 %v1710_v10  ;;  %474 = vmatpush.msrb.mxu3 %v1741_v27 }
  0x1b   :  { %369 = vmatmul.f32.vlgmr.msra.gmra.mxu3 %v1710_v10  ;;  %390 = vmatpush.msrb.mxu0 %v1741_v27 }
  0x1c   :  { %425 = vmatpush.msrb.mxu1 %v424_v54  ;;  %547 = vmatpush.msra.mxu2 %v1749_v32  ;;  %v1501_v54 = vld [vmem:[%s1934_s6 + $0x8] sm:$0xff] }
  0x1d   :  { %578 = vmatpush.msra.mxu3 %v577_v55  ;;  %v1561_v55 = vld [vmem:[%s1935_s7 + $0x8] sm:$0xff] }
  0x1e   :  { %549 = vmatpush.msra.mxu2 %v1756_v38 }
  0x1f   :  { %294 = vmatmul.f32.vlgmr.msra.gmra.mxu0 %v1729_v18  ;;  %584 = vmatpush.msra.mxu3 %v583_v56  ;;  %v728_v56 = vld [vmem:[%s1936_s3] sm:$0xff] }
  0x20   :  { %499 = vmatpush.msra.mxu0 %v416_v43  ;;  %319 = vmatmul.f32.vlgmr.msra.gmra.mxu1 %v1738_v24 }
  0x21   :  { %524 = vmatpush.msra.mxu1 %v1723_v16 }
  0x22   :  { %503 = vmatpush.msra.mxu0 %v422_v46  ;;  %453 = vmatmul.f32.vlgmr.msrb.gmra.mxu2 %v1729_v18 }
  0x23   :  { %478 = vmatmul.f32.vlgmr.msrb.gmra.mxu3 %v1738_v24  ;;  %526 = vmatpush.msra.mxu1 %v1741_v27 }
  0x24   :  { %658 = vmatpush.msrb.mxu2 %v575_v48  ;;  %683 = vmatpush.msrb.mxu3 %v1749_v32 }
  0x26   :  { %662 = vmatpush.msrb.mxu2 %v581_v49  ;;  %685 = vmatpush.msrb.mxu3 %v1756_v38 }
  0x27   :  { %396 = vmatmul.f32.vlgmr.msrb.gmra.mxu0 %v1758_v39 }
  0x28   :  { %606 = vmatpush.msrb.mxu0 %v574_v44  ;;  %427 = vmatmul.f32.vlgmr.msrb.gmra.mxu1 %v1710_v10 }
  0x29   :  { %631 = vmatpush.msrb.mxu1 %v1749_v32 }
  0x2a   :  { %609 = vmatpush.msrb.mxu0 %v580_v45  ;;  %555 = vmatmul.f32.vlgmr.msra.gmra.mxu2 %v1758_v39  ;;  %v738_v45 = vld [vmem:[%s1933_s4] sm:$0xff] }
  0x2b   :  { %586 = vmatmul.f32.vlgmr.msra.gmra.mxu3 %v1710_v10  ;;  %633 = vmatpush.msrb.mxu1 %v1756_v38 }
  0x2c   :  { %741 = vperm.xlu2 %1625, %v738_v45  }
  0x2f   :  { %505 = vmatmul.f32.vlgmr.msra.gmra.mxu0 %v1710_v10 }
  0x30   :  { %528 = vmatmul.f32.vlgmr.msra.gmra.mxu1 %v1710_v10 }
  0x32   :  { %664 = vmatmul.f32.vlgmr.msrb.gmra.mxu2 %v1710_v10 }
  0x33   :  { %687 = vmatmul.f32.vlgmr.msrb.gmra.mxu3 %v1710_v10 }
  0x34   :  { %1504 = vperm.xlu2 %1625, %v1500_v53  }
  0x37   :  { %612 = vmatmul.f32.vlgmr.msrb.gmra.mxu0 %v1729_v18 }
  0x38   :  { %637 = vmatmul.f32.vlgmr.msrb.gmra.mxu1 %v1738_v24 }
  0x3c   :  { %1509 = vperm.xlu2 %1625, %v1501_v54  }
  0x77   :  { %v49_v2 = vpop.permute.xlu0 %48 }
  0x8c   :  { %v79_v57 = vpop.f32.mrf.mxu0  ;;  %v110_v58 = vpop.f32.mrf.mxu1 }
  0x8d   :  { %v136_v59 = vpop.f32.mrf.mxu2  ;;  %v80_v7 = vadd.f32 %v79_v57, %v49_v2 }
  0x8e   :  { %v161_v60 = vpop.f32.mrf.mxu3 }
  0x8f   :  { %v111_v10 = vadd.f32 %v110_v58, %v80_v7  ;;  %v1617_v7 = vld [vmem:[%s1937_s5 + $0x18] sm:$0xff] }
  0x91   :  { %v137_v17 = vadd.f32 %v136_v59, %v111_v10  ;;  %v762_v10 = vsel %vm757_vm1, %v1617_v7, 0 }
  0x93   :  { %v162_v21 = vadd.f32 %v161_v60, %v137_v17  ;;  %v1855_v17 = vand.u32 4294901760, %v762_v10 }
  0x94   :  { %v188_v61 = vpop.f32.mrf.mxu0  ;;  %v211_v62 = vpop.f32.mrf.mxu1 }
  0x95   :  { %v238_v63 = vpop.f32.mrf.mxu2  ;;  %v189_v28 = vadd.f32 %v188_v61, %v162_v21 }
  0x96   :  { %v269_v0 = vpop.f32.mrf.mxu3  ;;  %v239_v5 = vadd.f32 %v238_v63, %v49_v2 }
  0x97   :  { %v1809_v33 = vadd.f32 %v211_v62, %v189_v28 }
  0x98   :  { %v270_v8 = vadd.f32 %v269_v0, %v239_v5  ;;  %v1616_v0 = vld [vmem:[%s1937_s5 + $0x10] sm:$0xff] }
  0x99   :  { %v696_v41 = vmul.f32 %v1809_v33, %v1809_v33 }
  0x9c   :  { %v295_v1 = vpop.f32.mrf.mxu0 }
  0x9d   :  { %v320_v3 = vpop.f32.mrf.mxu1  ;;  %v347_v4 = vpop.f32.mrf.mxu2  ;;  %v296_v14 = vadd.f32 %v295_v1, %v270_v8 }
  0x9e   :  { %v370_v6 = vpop.f32.mrf.mxu3 }
  0x9f   :  { %v321_v19 = vadd.f32 %v320_v3, %v296_v14 }
  0xa1   :  { %v348_v25 = vadd.f32 %v347_v4, %v321_v19 }
  0xa3   :  { %v1807_v30 = vadd.f32 %v370_v6, %v348_v25 }
  0xa4   :  { %v397_v9 = vpop.f32.mrf.mxu0 }
  0xa5   :  { %v398_v11 = vadd.f32 %v397_v9, %v49_v2  ;;  %v428_v12 = vpop.f32.mrf.mxu1  ;;  %v454_v13 = vpop.f32.mrf.mxu2  ;;  %v697_v38 = vmul.f32 %v1807_v30, %v1807_v30  ;;  %v691_v42 = vadd.f32 %v1807_v30, %v1809_v33 }
  0xa6   :  { %v479_v16 = vpop.f32.mrf.mxu3 }
  0xa7   :  { %v429_v15 = vadd.f32 %v428_v12, %v398_v11  ;;  %v700_v48 = vadd.f32 %v697_v38, %v696_v41 }
  0xa9   :  { %v455_v18 = vadd.f32 %v454_v13, %v429_v15 }
  0xab   :  { %v480_v22 = vadd.f32 %v479_v16, %v455_v18 }
  0xac   :  { %v506_v20 = vpop.f32.mrf.mxu0 }
  0xad   :  { %v529_v23 = vpop.f32.mrf.mxu1  ;;  %v556_v24 = vpop.f32.mrf.mxu2  ;;  %v507_v29 = vadd.f32 %v506_v20, %v480_v22 }
  0xae   :  { %v557_v26 = vadd.f32 %v556_v24, %v49_v2  ;;  %v587_v27 = vpop.f32.mrf.mxu3  ;;  %v759_v2 = vsel %vm757_vm1, %v1616_v0, 0  ;;  %v742_v24 = vpop.permute.xlu2 %741 }
  0xaf   :  { %v1811_v34 = vadd.f32 %v529_v23, %v507_v29  ;;  %v1846_v5 = vand.u32 4294901760, %v759_v2  ;;  %v752_v29 = vld [vmem:[%s1937_s5] sm:$0xff] }
  0xb0   :  { %v588_v31 = vadd.f32 %v587_v27, %v557_v26  ;;  %v790_v26 = vsub.f32 %v762_v10, %v1855_v17 }
  0xb1   :  { %v698_v44 = vmul.f32 %v1811_v34, %v1811_v34  ;;  %v692_v47 = vadd.f32 %v691_v42, %v1811_v34  ;;  %v782_v9 = vsub.f32 %v759_v2, %v1846_v5 }
  0xb3   :  { %v701_v51 = vadd.f32 %v700_v48, %v698_v44  ;;  %v783_v16 = vand.u32 4294901760, %v782_v9  ;;  %v753_v48 = vld [vmem:[%s1937_s5 + $0x8] sm:$0xff] }
  0xb4   :  { %v613_v32 = vpop.f32.mrf.mxu0  ;;  %v945_v54 = vsel %vm757_vm1, %v753_v48, 0 }
  0xb5   :  { %v614_v35 = vadd.f32 %v613_v32, %v588_v31  ;;  %v638_v36 = vpop.f32.mrf.mxu1  ;;  %v665_v37 = vpop.f32.mrf.mxu2  ;;  %v784_v25 = vsub.f32 %v782_v9, %v783_v16 }
  0xb6   :  { %v688_v40 = vpop.f32.mrf.mxu3 }
  0xb7   :  { %v639_v39 = vadd.f32 %v638_v36, %v614_v35  ;;  %v942_v35 = vsel %vm757_vm1, %v752_v29, 0  ;;  %v1621_v29 = vld [vmem:[%s1937_s5 + $0x38] sm:$0xff] }
  0xb8   :  { %v1864_v42 = vand.u32 4294901760, %v942_v35 }
  0xb9   :  { %v666_v43 = vadd.f32 %v665_v37, %v639_v39 }
  0xbb   :  { %v1824_v46 = vadd.f32 %v688_v40, %v666_v43 }
  0xbd   :  { %v693_v49 = vadd.f32 %v692_v47, %v1824_v46  ;;  %v699_v50 = vmul.f32 %v1824_v46, %v1824_v46 }
  0xbf   :  { %694 = vadd.xlane.f32.xlu0 %v693_v49  ;;  %v702_v52 = vadd.f32 %v701_v51, %v699_v50  ;;  %v1870_v51 = vsub.f32 %v942_v35, %v1864_v42 }
  0xc1   :  { %703 = vadd.xlane.f32.xlu1 %v702_v52 }
  0xd3   :  { %1569 = vperm.xlu0 %1623, %v1561_v55  }
  0xda   :  { %731 = vperm.xlu1 %1624, %v728_v56  }
 0x132   :  { %v695_v57 = vpop.xlane.xlu0 %694 }
 0x133   :  { %v705_v58 = vmul.f32 0.001953125, %v695_v57 }
 0x134   :  { %v704_v59 = vpop.xlane.xlu1 %703 }
 0x135   :  { %v706_v60 = vmul.f32 0.001953125, %v704_v59  ;;  %v707_v61 = vmul.f32 %v705_v58, %v705_v58  ;;  %v709_v12 = vsub.f32 %v1809_v33, %v705_v58  ;;  %v710_v13 = vsub.f32 %v1807_v30, %v705_v58 }
 0x136   :  { %v711_v18 = vsub.f32 %v1811_v34, %v705_v58  ;;  %v785_v33 = vand.u32 4294901760, %v784_v25  ;;  %v791_v34 = vand.u32 4294901760, %v790_v26  ;;  %v712_v38 = vsub.f32 %v1824_v46, %v705_v58 }
 0x137   :  { %v708_v62 = vsub.f32 %v706_v60, %v707_v61  ;;  %v966_v58 = vand.u32 4294901760, %v1870_v51  ;;  %v972_v59 = vand.u32 4294901760, %v945_v54 }
 0x138   :  { %v792_v44 = vsub.f32 %v790_v26, %v791_v34 }
 0x139   :  { %v713_v63 = vadd.f32 1e-05, %v708_v62  ;;  %v967_v61 = vsub.f32 %v1870_v51, %v966_v58 }
 0x13a   :  { %v793_v53 = vand.u32 4294901760, %v792_v44 }
 0x13b   :  { %1626 = vrsqrt.f32 %v713_v63  ;;  %vm720_vm3 = vweird.f32 %v713_v63 }
 0x141   :  { %v1627_v1 = vpop.eup %1626 }
 0x142   :  { %v715_v3 = vmul.f32 %v1627_v1, %v713_v63  ;;  %vm721_vm2 = vweird.f32 %v1627_v1  ;;  %v973_v63 = vsub.f32 %v945_v54, %v972_v59 }
 0x143   :  { %vm722_vm4 = vmor %vm720_vm3, %vm721_vm2 }
 0x144   :  { %v716_v4 = vmul.f32 %v1627_v1, %v715_v3  ;;  %v974_v3 = vand.u32 4294901760, %v973_v63 }
 0x146   :  { %v717_v6 = vmul.f32 0.5, %v716_v4  ;;  %v975_v7 = vsub.f32 %v973_v63, %v974_v3 }
 0x148   :  { %v718_v8 = vsub.f32 1.5, %v717_v6 }
 0x14a   :  { %v719_v11 = vmul.f32 %v1627_v1, %v718_v8 }
 0x14c   :  { %v723_v14 = vsel %vm722_vm4, %v1627_v1, %v719_v11  ;;  %v732_v15 = vpop.permute.xlu1 %731  ;;  %v968_v1 = vand.u32 4294901760, %v967_v61  ;;  %v976_v11 = vand.u32 4294901760, %v975_v7 }
 0x14d   :  { %v724_v19 = vmul.f32 %v723_v14, %v709_v12  ;;  %v725_v20 = vmul.f32 %v723_v14, %v710_v13  ;;  %v726_v21 = vmul.f32 %v723_v14, %v711_v18  ;;  %v727_v43 = vmul.f32 %v723_v14, %v712_v38 }
 0x14f   :  { %v734_v22 = vmul.f32 %v732_v15, %v724_v19  ;;  %v735_v23 = vmul.f32 %v732_v15, %v725_v20  ;;  %v736_v30 = vmul.f32 %v732_v15, %v726_v21  ;;  %v737_v52 = vmul.f32 %v732_v15, %v727_v43 }
 0x151   :  { %v744_v27 = vadd.f32 %v742_v24, %v734_v22  ;;  %v745_v28 = vadd.f32 %v742_v24, %v735_v23  ;;  %v746_v39 = vadd.f32 %v742_v24, %v736_v30  ;;  %v747_v60 = vadd.f32 %v742_v24, %v737_v52  ;;  %v1620_v23 = vld [vmem:[%s1937_s5 + $0x30] sm:$0xff] }
 0x153   :  { %v748_v31 = vmax.f32 %v744_v27, 0.0  ;;  %v749_v32 = vmax.f32 %v745_v28, 0.0  ;;  %v750_v46 = vmax.f32 %v746_v39, 0.0  ;;  %v751_v0 = vmax.f32 %v747_v60, 0.0 }
 0x155   :  { %v779_v36 = vand.u32 4294901760, %v749_v32  ;;  %v962_v37 = vand.u32 4294901760, %v748_v31  ;;  %v1148_v57 = vand.u32 4294901760, %v750_v46  ;;  %v1876_v4 = vand.u32 4294901760, %v751_v0 }
 0x157   :  { %780 = vmatpush.msra.mxu0 %v779_v36  ;;  %873 = vmatpush.msra.mxu3 %v779_v36  ;;  %v814_v40 = vsub.f32 %v749_v32, %v779_v36  ;;  %v997_v41 = vsub.f32 %v748_v31, %v962_v37  ;;  %v1183_v62 = vsub.f32 %v750_v46, %v1148_v57  ;;  %v1319_v32 = vsel %vm757_vm1, %v1621_v29, 0 }
 0x158   :  { %786 = vmatmul.f32.vlgmr.msra.gmra.mxu0 %v785_v33  ;;  %877 = vmatmul.f32.vlgmr.msra.gmra.mxu3 %v783_v16  ;;  %v1371_v8 = vsub.f32 %v751_v0, %v1876_v4  ;;  %v1619_v16 = vld [vmem:[%s1937_s5 + $0x28] sm:$0xff] }
 0x159   :  { %845 = vmatpush.msra.mxu2 %v814_v40  ;;  %v815_v45 = vand.u32 4294901760, %v814_v40  ;;  %v998_v47 = vand.u32 4294901760, %v997_v41  ;;  %v1184_v2 = vand.u32 4294901760, %v1183_v62 }
 0x15a   :  { %848 = vmatmul.f32.vlgmr.msra.gmra.mxu2 %v782_v9  ;;  %v1618_v9 = vld [vmem:[%s1937_s5 + $0x20] sm:$0xff]  ;;  %v1372_v12 = vand.u32 4294901760, %v1371_v8 }
 0x15b   :  { %963 = vmatpush.msrb.mxu2 %v962_v37  ;;  %905 = vmatpush.msrb.mxu0 %v815_v45  ;;  %v816_v49 = vsub.f32 %v814_v40, %v815_v45  ;;  %v999_v50 = vsub.f32 %v997_v41, %v998_v47  ;;  %v1185_v6 = vsub.f32 %v1183_v62, %v1184_v2  ;;  %v1128_v13 = vsel %vm757_vm1, %v1618_v9, 0 }
 0x15c   :  { %v1373_v14 = vsub.f32 %v1371_v8, %v1372_v12  ;;  %v1150_v15 = vand.u32 4294901760, %v1128_v13 }
 0x15d   :  { %1088 = vmatpush.msra.mxu2 %v998_v47  ;;  %1028 = vmatpush.msra.mxu0 %v997_v41  ;;  %v817_v55 = vand.u32 4294901760, %v816_v49  ;;  %v1000_v56 = vand.u32 4294901760, %v999_v50  ;;  %v1186_v10 = vand.u32 4294901760, %v1185_v6 }
 0x15e   :  { %v1374_v18 = vand.u32 4294901760, %v1373_v14  ;;  %v1151_v19 = vsub.f32 %v1128_v13, %v1150_v15 }
 0x15f   :  { %818 = vmatpush.msra.mxu1 %v817_v55  ;;  %1001 = vmatpush.msrb.mxu3 %v1000_v56 }
 0x160   :  { %794 = vmatmul.f32.gmra.mxu0 %v793_v53  ;;  %820 = vmatmul.f32.vlgmr.msra.gmra.mxu1 %v1846_v5  ;;  %v1152_v20 = vand.u32 4294901760, %v1151_v19 }
 0x161   :  { %883 = vmatmul.f32.gmra.mxu3 %v791_v34  ;;  %931 = vmatpush.msrb.mxu1 %v779_v36  ;;  %v1346_v34 = vand.u32 4294901760, %v1319_v32 }
 0x162   :  { %1114 = vmatpush.msra.mxu3 %v962_v37  ;;  %853 = vmatmul.f32.gmra.mxu2 %v790_v26  ;;  %v1153_v22 = vsub.f32 %v1151_v19, %v1152_v20  ;;  %v1316_v26 = vsel %vm757_vm1, %v1620_v23, 0 }
 0x163   :  { %1056 = vmatpush.msra.mxu1 %v962_v37  ;;  %v1338_v27 = vand.u32 4294901760, %v1316_v26  ;;  %v1347_v36 = vsub.f32 %v1319_v32, %v1346_v34 }
 0x164   :  { %v1154_v24 = vand.u32 4294901760, %v1153_v22 }
 0x165   :  { %v1339_v30 = vsub.f32 %v1316_v26, %v1338_v27  ;;  %v1348_v38 = vand.u32 4294901760, %v1347_v36 }
 0x167   :  { %v1340_v33 = vand.u32 4294901760, %v1339_v30  ;;  %v1349_v39 = vsub.f32 %v1347_v36, %v1348_v38 }
 0x168   :  { %824 = vmatmul.f32.gmra.mxu1 %v1855_v17  ;;  %907 = vmatmul.f32.vlgmr.msrb.gmra.mxu0 %v1846_v5 }
 0x169   :  { %1003 = vmatmul.f32.vlgmr.msrb.gmra.mxu3 %v1864_v42  ;;  %1149 = vmatpush.msrb.mxu0 %v1148_v57  ;;  %v1341_v35 = vsub.f32 %v1339_v30, %v1340_v33  ;;  %v1350_v40 = vand.u32 4294901760, %v1349_v39 }
 0x16a   :  { %1242 = vmatpush.msrb.mxu3 %v1148_v57  ;;  %969 = vmatmul.f32.vlgmr.msrb.gmra.mxu2 %v968_v1 }
 0x16b   :  { %1214 = vmatpush.msrb.mxu2 %v1183_v62  ;;  %v1342_v37 = vand.u32 4294901760, %v1341_v35 }
 0x170   :  { %911 = vmatmul.f32.gmra.mxu0 %v1855_v17  ;;  %933 = vmatmul.f32.vlgmr.msrb.gmra.mxu1 %v1846_v5  ;;  %v1131_v5 = vsel %vm757_vm1, %v1619_v16, 0 }
 0x171   :  { %1007 = vmatmul.f32.gmra.mxu3 %v972_v59  ;;  %1187 = vmatpush.msrb.mxu1 %v1186_v10  ;;  %v1158_v21 = vand.u32 4294901760, %v1131_v5 }
 0x172   :  { %977 = vmatmul.f32.gmra.mxu2 %v976_v11 }
 0x178   :  { %937 = vmatmul.f32.gmra.mxu1 %v1855_v17  ;;  %1031 = vmatmul.f32.vlgmr.msra.gmra.mxu0 %v1870_v51  ;;  %v1159_v17 = vsub.f32 %v1131_v5, %v1158_v21 }
 0x179   :  { %1116 = vmatmul.f32.vlgmr.msra.gmra.mxu3 %v1864_v42  ;;  %1274 = vmatpush.msra.mxu0 %v1184_v2 }
 0x17a   :  { %1375 = vmatpush.msra.mxu3 %v1374_v18  ;;  %1090 = vmatmul.f32.vlgmr.msra.gmra.mxu2 %v1864_v42  ;;  %v1160_v25 = vand.u32 4294901760, %v1159_v17 }
 0x17b   :  { %1337 = vmatpush.msra.mxu2 %v1876_v4 }
 0x17c   :  { %v1161_v28 = vsub.f32 %v1159_v17, %v1160_v25 }
 0x17e   :  { %v1162_v31 = vand.u32 4294901760, %v1161_v28 }
 0x180   :  { %1036 = vmatmul.f32.gmra.mxu0 %v973_v63  ;;  %1060 = vmatmul.f32.vlgmr.msra.gmra.mxu1 %v966_v58 }
 0x181   :  { %1120 = vmatmul.f32.gmra.mxu3 %v972_v59  ;;  %1300 = vmatpush.msra.mxu1 %v1148_v57 }
 0x182   :  { %1094 = vmatmul.f32.gmra.mxu2 %v972_v59 }
 0x188   :  { %1066 = vmatmul.f32.gmra.mxu1 %v974_v3  ;;  %1155 = vmatmul.f32.vlgmr.msrb.gmra.mxu0 %v1154_v24 }
 0x189   :  { %1246 = vmatmul.f32.vlgmr.msrb.gmra.mxu3 %v1152_v20  ;;  %1402 = vmatpush.msrb.mxu0 %v1371_v8 }
 0x18a   :  { %1488 = vmatpush.msrb.mxu3 %v1876_v4  ;;  %1217 = vmatmul.f32.vlgmr.msrb.gmra.mxu2 %v1151_v19 }
 0x18b   :  { %1462 = vmatpush.msrb.mxu2 %v1372_v12 }
 0x190   :  { %1189 = vmatmul.f32.vlgmr.msrb.gmra.mxu1 %v1150_v15  ;;  %1163 = vmatmul.f32.gmra.mxu0 %v1162_v31 }
 0x191   :  { %1430 = vmatpush.msrb.mxu1 %v1876_v4  ;;  %1252 = vmatmul.f32.gmra.mxu3 %v1160_v25 }
 0x192   :  { %1222 = vmatmul.f32.gmra.mxu2 %v1159_v17 }
 0x198   :  { %1193 = vmatmul.f32.gmra.mxu1 %v1158_v21  ;;  %1276 = vmatmul.f32.vlgmr.msra.gmra.mxu0 %v1150_v15 }
 0x199   :  { %1377 = vmatmul.f32.vlgmr.msra.gmra.mxu3 %v1338_v27 }
 0x19a   :  { %1343 = vmatmul.f32.vlgmr.msra.gmra.mxu2 %v1342_v37 }
 0x1a0   :  { %1302 = vmatmul.f32.vlgmr.msra.gmra.mxu1 %v1150_v15  ;;  %1280 = vmatmul.f32.gmra.mxu0 %v1158_v21 }
 0x1a1   :  { %1381 = vmatmul.f32.gmra.mxu3 %v1346_v34 }
 0x1a2   :  { %1351 = vmatmul.f32.gmra.mxu2 %v1350_v40 }
 0x1a8   :  { %1306 = vmatmul.f32.gmra.mxu1 %v1158_v21  ;;  %1405 = vmatmul.f32.vlgmr.msrb.gmra.mxu0 %v1339_v30 }
 0x1a9   :  { %1490 = vmatmul.f32.vlgmr.msrb.gmra.mxu3 %v1338_v27 }
 0x1aa   :  { %1464 = vmatmul.f32.vlgmr.msrb.gmra.mxu2 %v1338_v27 }
 0x1b0   :  { %1434 = vmatmul.f32.vlgmr.msrb.gmra.mxu1 %v1340_v33  ;;  %1410 = vmatmul.f32.gmra.mxu0 %v1347_v36 }
 0x1b1   :  { %1494 = vmatmul.f32.gmra.mxu3 %v1346_v34 }
 0x1b2   :  { %1468 = vmatmul.f32.gmra.mxu2 %v1346_v34 }
 0x1b8   :  { %1440 = vmatmul.f32.gmra.mxu1 %v1348_v38 }
 0x1d5   :  { %v787_v41 = vpop.f32.mrf.mxu0 }
 0x1db   :  { %v878_v42 = vpop.f32.mrf.mxu3 }
 0x1dd   :  { %v795_v43 = vpop.f32.mrf.mxu0  ;;  %v821_v44 = vpop.f32.mrf.mxu1 }
 0x1de   :  { %v849_v45 = vpop.f32.mrf.mxu2  ;;  %v822_v7 = vadd.f32 %v821_v44, %v787_v41 }
 0x1e0   :  { %v850_v8 = vadd.f32 %v849_v45, %v822_v7 }
 0x1e2   :  { %v879_v13 = vadd.f32 %v878_v42, %v850_v8 }
 0x1e4   :  { %v884_v47 = vpop.f32.mrf.mxu3 }
 0x1e5   :  { %v825_v48 = vpop.f32.mrf.mxu1  ;;  %v908_v46 = vpop.f32.mrf.mxu0 }
 0x1e6   :  { %v854_v49 = vpop.f32.mrf.mxu2  ;;  %v826_v14 = vadd.f32 %v825_v48, %v795_v43  ;;  %v909_v15 = vadd.f32 %v908_v46, %v879_v13 }
 0x1e8   :  { %v855_v16 = vadd.f32 %v854_v49, %v826_v14 }
 0x1ea   :  { %v885_v22 = vadd.f32 %v884_v47, %v855_v16 }
 0x1ec   :  { %v1004_v50 = vpop.f32.mrf.mxu3 }
 0x1ed   :  { %v912_v51 = vpop.f32.mrf.mxu0  ;;  %v934_v52 = vpop.f32.mrf.mxu1 }
 0x1ee   :  { %v970_v53 = vpop.f32.mrf.mxu2  ;;  %v935_v18 = vadd.f32 %v934_v52, %v909_v15  ;;  %v913_v23 = vadd.f32 %v912_v51, %v885_v22 }
 0x1f0   :  { %v971_v17 = vadd.f32 %v970_v53, %v935_v18  ;;  %v1560_v18 = vld [vmem:[%s1935_s7] sm:$0xff] }
 0x1f2   :  { %v1005_v25 = vadd.f32 %v1004_v50, %v971_v17 }
 0x1f4   :  { %v1008_v54 = vpop.f32.mrf.mxu3 }
 0x1f5   :  { %v938_v55 = vpop.f32.mrf.mxu1  ;;  %v1032_v56 = vpop.f32.mrf.mxu0 }
 0x1f6   :  { %v978_v57 = vpop.f32.mrf.mxu2  ;;  %v939_v26 = vadd.f32 %v938_v55, %v913_v23  ;;  %v1033_v29 = vadd.f32 %v1032_v56, %v1005_v25 }
 0x1f8   :  { %v979_v33 = vadd.f32 %v978_v57, %v939_v26 }
 0x1fa   :  { %v1009_v38 = vadd.f32 %v1008_v54, %v979_v33 }
 0x1fc   :  { %v1117_v58 = vpop.f32.mrf.mxu3 }
 0x1fd   :  { %v1037_v59 = vpop.f32.mrf.mxu0  ;;  %v1061_v60 = vpop.f32.mrf.mxu1 }
 0x1fe   :  { %v1091_v61 = vpop.f32.mrf.mxu2  ;;  %v1062_v34 = vadd.f32 %v1061_v60, %v1033_v29  ;;  %v1038_v44 = vadd.f32 %v1037_v59, %v1009_v38  ;;  %v1505_v60 = vpop.permute.xlu2 %1504 }
 0x200   :  { %v1092_v39 = vadd.f32 %v1091_v61, %v1062_v34 }
 0x202   :  { %v1118_v49 = vadd.f32 %v1117_v58, %v1092_v39 }
 0x204   :  { %v1907_v62 = vpop.f32.mrf.mxu3 }
 0x205   :  { %v1067_v63 = vpop.f32.mrf.mxu1  ;;  %v1156_v0 = vpop.f32.mrf.mxu0 }
 0x206   :  { %v1095_v1 = vpop.f32.mrf.mxu2  ;;  %v1068_v50 = vadd.f32 %v1067_v63, %v1038_v44 }
 0x208   :  { %v1096_v54 = vadd.f32 %v1095_v1, %v1068_v50  ;;  %v1510_v1 = vpop.permute.xlu2 %1509 }
 0x20a   :  { %v1122_v58 = vadd.f32 %v1907_v62, %v1096_v54  ;;  %v1575_v62 = vld [vmem:[%s1938_s8 + $0x8] sm:$0xff] }
 0x20c   :  { %v1247_v2 = vpop.f32.mrf.mxu3 }
 0x20d   :  { %v1190_v3 = vpop.f32.mrf.mxu1  ;;  %v1164_v4 = vpop.f32.mrf.mxu0 }
 0x20e   :  { %v1218_v6 = vpop.f32.mrf.mxu2  ;;  %v1191_v24 = vadd.f32 %v1190_v3, %v1156_v0 }
 0x210   :  { %v1219_v30 = vadd.f32 %v1218_v6, %v1191_v24 }
 0x212   :  { %v1248_v35 = vadd.f32 %v1247_v2, %v1219_v30 }
 0x214   :  { %v1253_v9 = vpop.f32.mrf.mxu3 }
 0x215   :  { %v1194_v10 = vpop.f32.mrf.mxu1  ;;  %v1277_v11 = vpop.f32.mrf.mxu0 }
 0x216   :  { %v1223_v12 = vpop.f32.mrf.mxu2  ;;  %v1195_v36 = vadd.f32 %v1194_v10, %v1164_v4  ;;  %v1278_v40 = vadd.f32 %v1277_v11, %v1248_v35 }
 0x218   :  { %v1224_v45 = vadd.f32 %v1223_v12, %v1195_v36 }
 0x21a   :  { %v1254_v53 = vadd.f32 %v1253_v9, %v1224_v45 }
 0x21c   :  { %v1378_v19 = vpop.f32.mrf.mxu3 }
 0x21d   :  { %v1303_v5 = vpop.f32.mrf.mxu1  ;;  %v1281_v20 = vpop.f32.mrf.mxu0 }
 0x21e   :  { %v1344_v21 = vpop.f32.mrf.mxu2  ;;  %v1304_v47 = vadd.f32 %v1303_v5, %v1278_v40  ;;  %v1282_v61 = vadd.f32 %v1281_v20, %v1254_v53  ;;  %v1570_v5 = vpop.permute.xlu0 %1569 }
 0x21f   :  { %v1379_v37 = vadd.f32 %v1378_v19, %v1344_v21  ;;  %v1574_v19 = vld [vmem:[%s1938_s8] sm:$0xff] }
 0x220   :  { %v1310_v55 = vadd.f32 %v1304_v47, %v1118_v49 }
 0x224   :  { %v1382_v28 = vpop.f32.mrf.mxu3 }
 0x225   :  { %v1307_v27 = vpop.f32.mrf.mxu1  ;;  %v1406_v32 = vpop.f32.mrf.mxu0 }
 0x226   :  { %v1352_v31 = vpop.f32.mrf.mxu2  ;;  %v1407_v41 = vadd.f32 %v1406_v32, %v1379_v37  ;;  %v1308_v4 = vadd.f32 %v1307_v27, %v1282_v61 }
 0x227   :  { %v1383_v56 = vadd.f32 %v1382_v28, %v1352_v31 }
 0x228   :  { %v1311_v11 = vadd.f32 %v1308_v4, %v1122_v58 }
 0x22c   :  { %v1491_v43 = vpop.f32.mrf.mxu3 }
 0x22d   :  { %v1435_v42 = vpop.f32.mrf.mxu1  ;;  %v1411_v52 = vpop.f32.mrf.mxu0 }
 0x22e   :  { %v1436_v48 = vadd.f32 %v1435_v42, %v1407_v41  ;;  %v1465_v46 = vpop.f32.mrf.mxu2  ;;  %v1412_v0 = vadd.f32 %v1411_v52, %v1383_v56 }
 0x230   :  { %v1466_v51 = vadd.f32 %v1465_v46, %v1436_v48 }
 0x232   :  { %v1492_v57 = vadd.f32 %v1491_v43, %v1466_v51 }
 0x234   :  { %v1498_v2 = vadd.f32 %v1492_v57, %v1310_v55  ;;  %v1495_v8 = vpop.f32.mrf.mxu3 }
 0x235   :  { %v1441_v3 = vpop.f32.mrf.mxu1 }
 0x236   :  { %v1442_v59 = vadd.f32 %v1441_v3, %v1412_v0  ;;  %v1469_v6 = vpop.f32.mrf.mxu2  ;;  %v1512_v7 = vadd.f32 %v1505_v60, %v1498_v2  ;;  %v1606_v3 = vstv %s1939_s9 }
 0x238   :  { %v1470_v63 = vadd.f32 %v1469_v6, %v1442_v59  ;;  %v1514_v10 = vmax.f32 %v1512_v7, 0.0 }
 0x23a   :  { %v1496_v9 = vadd.f32 %v1495_v8, %v1470_v63  ;;  %1516 = vadd.xlane.f32.xlu2 %v1514_v10  ;;  %v1520_v12 = vmul.f32 %v1514_v10, %v1514_v10 }
 0x23c   :  { %v1499_v13 = vadd.f32 %v1496_v9, %v1311_v11  ;;  %1522 = vadd.xlane.f32.xlu0 %v1520_v12 }
 0x23e   :  { %v1513_v14 = vadd.f32 %v1510_v1, %v1499_v13 }
 0x240   :  { %v1515_v15 = vmax.f32 %v1513_v14, 0.0 }
 0x242   :  { %1518 = vadd.xlane.f32.xlu1 %v1515_v15  ;;  %v1521_v16 = vmul.f32 %v1515_v15, %v1515_v15 }
 0x244   :  { %1524 = vadd.xlane.f32.xlu0 %v1521_v16 }
 0x252   :  { %1564 = vperm.xlu2 %1625, %v1560_v18  }
 0x258   :  { %1583 = vperm.xlu0 %1623, %v1575_v62  }
 0x25b   :  { %1578 = vperm.xlu1 %1624, %v1574_v19  }
 0x2ad   :  { %v1517_v20 = vpop.xlane.xlu2 %1516 }
 0x2ae   :  { %v1526_v21 = vmul.f32 0.0078125, %v1517_v20 }
 0x2af   :  { %v1523_v22 = vpop.xlane.xlu0 %1522 }
 0x2b0   :  { %v1530_v17 = vmul.f32 %v1526_v21, %v1526_v21  ;;  %v1528_v23 = vmul.f32 0.0078125, %v1523_v22  ;;  %v1534_v41 = vsub.f32 %v1514_v10, %v1526_v21 }
 0x2b2   :  { %v1532_v24 = vsub.f32 %v1528_v23, %v1530_v17 }
 0x2b4   :  { %v1536_v25 = vadd.f32 1e-05, %v1532_v24 }
 0x2b5   :  { %v1519_v26 = vpop.xlane.xlu1 %1518  ;;  %v1565_v47 = vpop.permute.xlu2 %1564 }
 0x2b6   :  { %1628 = vrsqrt.f32 %v1536_v25  ;;  %v1527_v27 = vmul.f32 0.0078125, %v1519_v26  ;;  %vm1544_vm6 = vweird.f32 %v1536_v25 }
 0x2b7   :  { %v1525_v28 = vpop.xlane.xlu0 %1524 }
 0x2b8   :  { %v1531_v29 = vmul.f32 %v1527_v27, %v1527_v27  ;;  %v1529_v30 = vmul.f32 0.0078125, %v1525_v28  ;;  %v1535_v51 = vsub.f32 %v1515_v15, %v1527_v27 }
 0x2ba   :  { %v1533_v31 = vsub.f32 %v1529_v30, %v1531_v29 }
 0x2bc   :  { %v1629_v32 = vpop.eup %1628  ;;  %v1537_v33 = vadd.f32 1e-05, %v1533_v31 }
 0x2bd   :  { %v1539_v34 = vmul.f32 %v1629_v32, %v1536_v25  ;;  %vm1545_vm5 = vweird.f32 %v1629_v32 }
 0x2be   :  { %1630 = vrsqrt.f32 %v1537_v33  ;;  %vm1546_vm7 = vmor %vm1544_vm6, %vm1545_vm5  ;;  %vm1554_vm9 = vweird.f32 %v1537_v33 }
 0x2bf   :  { %v1540_v35 = vmul.f32 %v1629_v32, %v1539_v34 }
 0x2c1   :  { %v1541_v36 = vmul.f32 0.5, %v1540_v35 }
 0x2c3   :  { %v1542_v37 = vsub.f32 1.5, %v1541_v36 }
 0x2c4   :  { %v1631_v38 = vpop.eup %1630 }
 0x2c5   :  { %v1543_v39 = vmul.f32 %v1629_v32, %v1542_v37  ;;  %v1549_v40 = vmul.f32 %v1631_v38, %v1537_v33  ;;  %vm1555_vm8 = vweird.f32 %v1631_v38 }
 0x2c6   :  { %vm1556_vm12 = vmor %vm1554_vm9, %vm1555_vm8 }
 0x2c7   :  { %v1547_v42 = vsel %vm1546_vm7, %v1629_v32, %v1543_v39  ;;  %v1550_v43 = vmul.f32 %v1631_v38, %v1549_v40 }
 0x2c8   :  { %v1558_v44 = vmul.f32 %v1547_v42, %v1534_v41 }
 0x2c9   :  { %v1551_v45 = vmul.f32 0.5, %v1550_v43 }
 0x2ca   :  { %v1572_v46 = vmul.f32 %v1565_v47, %v1558_v44  ;;  %v1584_v54 = vpop.permute.xlu0 %1583 }
 0x2cb   :  { %v1552_v48 = vsub.f32 1.5, %v1551_v45 }
 0x2cd   :  { %v1553_v49 = vmul.f32 %v1631_v38, %v1552_v48  ;;  %v1579_v50 = vpop.permute.xlu1 %1578 }
 0x2ce   :  { %v1586_v52 = vadd.f32 %v1579_v50, %v1572_v46 }
 0x2cf   :  { %v1557_v53 = vsel %vm1556_vm12, %v1631_v38, %v1553_v49 }
 0x2d0   :  { %v1559_v55 = vmul.f32 %v1557_v53, %v1535_v51  ;;  %v1597_v56 = vsel %vm1596_vm10, %v1586_v52, -inf  ;;  %v1590_v57 = vsel %vm1589_vm11, %v1586_v52, -inf }
 0x2d1   :  { %1598 = vmax.xlane.f32.xlu1 %v1597_v56  ;;  %1591 = vmax.xlane.f32.xlu2 %v1590_v57 }
 0x2d2   :  { %v1573_v60 = vmul.f32 %v1570_v5, %v1559_v55 }
 0x2d4   :  { %v1587_v61 = vadd.f32 %v1584_v54, %v1573_v60 }
 0x2d6   :  { %v1593_v0 = vsel %vm1589_vm11, %v1587_v61, -inf  ;;  %v1600_v2 = vsel %vm1596_vm10, %v1587_v61, -inf }
 0x2d7   :  { %1594 = vmax.xlane.f32.xlu0 %v1593_v0 }
 0x2d9   :  { %1601 = vmax.xlane.f32.xlu2 %v1600_v2 }
 0x344   :  { %v1599_v4 = vpop.xlane.xlu1 %1598  ;;  %v1592_v59 = vpop.xlane.xlu2 %1591 }
 0x345   :  { %v1604_v6 = vsel %vm1603_vm13, %v1592_v59, %v1599_v4 }
 0x346   :  { %v1607_v7 = vmul.f32 %v1606_v3, %v1604_v6 }
 0x348   :  { %1610 = vst.msk [vmem:[%s1940_s10] sm:$0xff] %vm1609_vm14, %v1607_v7 }
 0x34a   :  { %v1595_v8 = vpop.xlane.xlu0 %1594 }
 0x34c   :  { %v1602_v58 = vpop.xlane.xlu2 %1601 }
 0x34d   :  { %v1605_v63 = vsel %vm1603_vm13, %v1595_v8, %v1602_v58 }
 0x34e   :  { %v1608_v10 = vmul.f32 %v1606_v3, %v1605_v63 }
 0x350   :  { %1611 = vst.msk [vmem:[%s1940_s10 + $0x8] sm:$0xff] %vm1609_vm14, %v1608_v10 }

</bundles_post_ra>
